<compile_context>
chip_gen: v7x
topology: tpu7x:2x2x1
jax: 0.10.0
libtpu: 0.0.40
codegen_flags: <defaults>
</compile_context>

<pallas_src>
import math

import jax
import jax.numpy as jnp
from jax.experimental import pallas as pl
from jax.experimental.pallas import tpu as pltpu

_TWO_PI = 2.0 * math.pi


def _learned_pos_emb_kernel(x_ref, wcat_ref, o_ref):
    # x_ref:    (TB, 1)          time values for this batch tile
    # wcat_ref: (1, 1+2*half)    [0, weights, weights]  (constant across grid)
    # o_ref:    (TB, 1+2*half)
    x = x_ref[...]                                   # (TB, 1)
    w = wcat_ref[...]                                # (1, OD)
    tb = x.shape[0]
    od = w.shape[1]
    half = (od - 1) // 2

    freqs = (x * _TWO_PI) * w                        # (TB, OD), VPU broadcast
    s = jnp.sin(freqs)                               # EUP
    c = jnp.cos(freqs)                               # EUP

    col = jax.lax.broadcasted_iota(jnp.int32, (tb, od), 1)
    # col 0 -> x passthrough, cols [1, half] -> sin, cols (half, 2*half] -> cos
    out = jnp.where(col == 0, x, jnp.where(col <= half, s, c))
    o_ref[...] = out.astype(o_ref.dtype)             # single lane-dense store


def _round_up(n, m):
    return ((n + m - 1) // m) * m


def learned_positional_embedding(x, weights):
    """Pallas forward pass of LearnedPositionalEmbedding.

    Args:
      x:       (B,) float array of continuous time values.
      weights: (half_dim,) learned frequency parameters.

    Returns:
      (B, 2*half_dim + 1) array = concat([x, sin(2*pi*x*w), cos(2*pi*x*w)], -1).
    """
    assert x.ndim == 1, "x must be a 1-D (batch,) tensor of time values"
    assert weights.ndim == 1
    batch = x.shape[0]
    half_dim = weights.shape[0]
    out_dim = 2 * half_dim + 1
    dtype = jnp.result_type(x.dtype, weights.dtype)
    itemsize = jnp.dtype(dtype).itemsize

    # ---- batch tiling: sublane-aligned tiles writing ~1 MiB of output each ----
    target_bytes = 1 << 20
    rows_for_target = _round_up(max(1, target_bytes // (out_dim * itemsize)), 8)
    batch_pad8 = _round_up(batch, 8)
    block_b = min(rows_for_target, batch_pad8)       # multiple of 8
    batch_padded = _round_up(batch, block_b)
    grid = (batch_padded // block_b,)

    # ---- wrapper-side layout plumbing (cheap, one-time) ----
    x2 = x.astype(dtype).reshape(batch, 1)
    if batch_padded != batch:
        x2 = jnp.pad(x2, ((0, batch_padded - batch), (0, 0)))
    w_cat = jnp.concatenate(
        [jnp.zeros((1,), dtype), weights.astype(dtype), weights.astype(dtype)]
    ).reshape(1, out_dim)

    cost = pl.CostEstimate(
        flops=2 * batch_padded * out_dim,
        transcendentals=2 * batch_padded * out_dim,
        bytes_accessed=(batch_padded * itemsize
                        + out_dim * itemsize
                        + batch_padded * out_dim * itemsize),
    )

    out = pl.pallas_call(
        _learned_pos_emb_kernel,
        out_shape=jax.ShapeDtypeStruct((batch_padded, out_dim), dtype),
        grid=grid,
        in_specs=[
            pl.BlockSpec((block_b, 1), lambda i: (i, 0)),
            pl.BlockSpec((1, out_dim), lambda i: (0, 0)),  # constant -> fetched once
        ],
        out_specs=pl.BlockSpec((block_b, out_dim), lambda i: (i, 0)),
        compiler_params=pltpu.CompilerParams(
            dimension_semantics=("parallel",)),
        cost_estimate=cost,
    )(x2, w_cat)

    return out[:batch]


if __name__ == "__main__":
    key = jax.random.PRNGKey(0)
    k_w, k_x = jax.random.split(key)

    batch = 2
    dim = 32                 # module's `dim`; must be even
    half_dim = dim // 2

    # nn.Parameter(torch.randn(half_dim)) analogue.
    weights = jax.random.normal(k_w, (half_dim,), dtype=jnp.float32)
    # Continuous time input x of shape (B,).
    x = jax.random.uniform(k_x, (batch,), dtype=jnp.float32)

    out = learned_positional_embedding(x, weights)
    out = jax.block_until_ready(out)

    # Reference in plain JAX.
    freqs = x[:, None] * weights[None, :] * 2.0 * math.pi
    ref = jnp.concatenate([x[:, None], jnp.sin(freqs), jnp.cos(freqs)], axis=-1)

    assert out.shape == (batch, dim + 1), out.shape
    assert out.dtype == jnp.float32
    assert jnp.allclose(out, ref, rtol=1e-5, atol=2e-5), "mismatch vs reference"

    print("KERNEL_OK")
</pallas_src>

<mosaic_0001>
module attributes {stable_mosaic.version = 11 : i64} {
  func.func @_learned_pos_emb_kernel(%arg0: i32, %arg1: memref<8x1xf32, #tpu.memory_space<vmem>>, %arg2: memref<1x33xf32, #tpu.memory_space<vmem>>, %arg3: memref<8x33xf32, #tpu.memory_space<vmem>>) attributes {dimension_semantics = [#tpu.dimension_semantics<parallel>], iteration_bounds = array<i64: 1>, scalar_prefetch = 0 : i64, scratch_operands = 0 : i64, tpu.core_type = #tpu.core_type<tc>, window_params = [{transform_indices = @transform_0, window_bounds = array<i64: 8, 1>}, {pipeline_mode = #tpu.pipeline_mode<synchronous>, transform_indices = @transform_1, window_bounds = array<i64: 1, 33>}, {transform_indices = @transform_2, window_bounds = array<i64: 8, 33>}]} {
    %c0 = arith.constant 0 : index
    %c0_0 = arith.constant 0 : index
    %0 = vector.load %arg1[%c0, %c0_0] : memref<8x1xf32, #tpu.memory_space<vmem>>, vector<8x1xf32>
    %c0_1 = arith.constant 0 : index
    %c0_2 = arith.constant 0 : index
    %1 = vector.load %arg2[%c0_1, %c0_2] : memref<1x33xf32, #tpu.memory_space<vmem>>, vector<1x33xf32>
    %cst = arith.constant 6.28318548 : f32
    %2 = vector.broadcast %cst : f32 to vector<8x1xf32>
    %3 = arith.mulf %0, %2 : vector<8x1xf32>
    %4 = vector.broadcast %3 : vector<8x1xf32> to vector<8x33xf32>
    %5 = vector.broadcast %1 : vector<1x33xf32> to vector<8x33xf32>
    %6 = arith.mulf %4, %5 : vector<8x33xf32>
    %7 = math.sin %6 : vector<8x33xf32>
    %8 = math.cos %6 : vector<8x33xf32>
    %9 = tpu.iota {dimensions = array<i32: 1>} : vector<8x33xi32>
    %c0_i32 = arith.constant 0 : i32
    %10 = vector.broadcast %c0_i32 : i32 to vector<8x33xi32>
    %11 = arith.cmpi eq, %9, %10 : vector<8x33xi32>
    %c16_i32 = arith.constant 16 : i32
    %12 = vector.broadcast %c16_i32 : i32 to vector<8x33xi32>
    %13 = arith.cmpi sle, %9, %12 : vector<8x33xi32>
    %14 = arith.select %13, %7, %8 : vector<8x33xi1>, vector<8x33xf32>
    %15 = vector.shape_cast %0 : vector<8x1xf32> to vector<8x1xf32>
    %16 = vector.broadcast %15 : vector<8x1xf32> to vector<8x33xf32>
    %17 = arith.select %11, %16, %14 : vector<8x33xi1>, vector<8x33xf32>
    %c0_3 = arith.constant 0 : index
    %c0_4 = arith.constant 0 : index
    %18 = vector.load %arg3[%c0_3, %c0_4] : memref<8x33xf32, #tpu.memory_space<vmem>>, vector<8x33xf32>
    tpu.vector_store %arg3[%c0_3, %c0_4], %17 {strides = array<i32>} : memref<8x33xf32, #tpu.memory_space<vmem>>, vector<8x33xf32>,
    return
  }
  func.func @transform_0(%arg0: i32) -> (i32, i32) {
    %c0_i32 = arith.constant 0 : i32
    %c0_i32_0 = arith.constant 0 : i32
    return %arg0, %c0_i32 : i32, i32
  }
  func.func @transform_1(%arg0: i32) -> (i32, i32) {
    %c0_i32 = arith.constant 0 : i32
    %c0_i32_0 = arith.constant 0 : i32
    %c0_i32_1 = arith.constant 0 : i32
    return %c0_i32, %c0_i32_0 : i32, i32
  }
  func.func @transform_2(%arg0: i32) -> (i32, i32) {
    %c0_i32 = arith.constant 0 : i32
    %c0_i32_0 = arith.constant 0 : i32
    return %arg0, %c0_i32 : i32, i32
  }
}

</mosaic_0001>

<bundles_post_ra>
// kernel: tpu_custom_call.1
= control target key start
LH: loop header
LB: loop body
LE: loop exit
PB: predicated region body
PF: predicated region fallthrough
CT: control target
= control target key end

     0   :  { %v311_v1 = vmov 0   ;;  %s374_s0 = inlined_call_operand.vmem [shape: f32[8,1], index: 0, kind: input, shape index: {}]   ;;  %s375_s1 = inlined_call_operand.vmem [shape: f32[1,33], index: 1, kind: input, shape index: {}]   ;;  %s376_s2 = inlined_call_operand.hbm [shape: f32[8,33], index: 2, kind: output, shape index: {}]  }
   0x1   :  { %v12_v0 = vld [vmem:[%s374_s0] sm:$0xff]  ;;  %282 = vset.pattern.permute.xlu0 %v311_v1 }
   0x2   :  { %v14_v2 = vmul.f32 6.2831855, %v12_v0 }
   0x4   :  { %17 = vperm.xlu0 %282, %v14_v2  }
   0x5   :  { %7 = vsyncpa [#allocation3], 0  ;;  %v261_v3 = vld [vmem:[%s375_s1] ss:$0 sm:$0xff]  ;;  %v312_v16 = vmov 683565275  }
   0x6   :  { %v313_v18 = vmov 2475754826   ;;  %v314_v21 = vmov 2131351028   ;;  %v315_v24 = vmov 2102212464  }
   0x7   :  { %v316_v27 = vmov 920167782   ;;  %v317_v30 = vmov 1326507024   ;;  %s318_s0 = smov [#allocation2]  }
   0x8   :  { %241 = vperm.xlu0 %282, %v12_v0   ;;  %s253_s1 = sshll.u32 %s318_s0, 4  ;;  %s254_s1 = int_to_ptr.vmem [resolvable:$true] %s253_s1 }
   0x9   :  { %s287_s13 = scalar_lea.vmem %s254_s1, 128  ;;  %p292_p1 = scmp.lt.s32.totalorder %s254_s1, %s254_s1 }
   0xa   :  { %p288_p0 = scmp.ne.s32.totalorder %s254_s1, %s287_s13  ;;  %p293_p2 = scmp.lt.s32.totalorder %s287_s13, %s287_s13 }
   0xc   :  { %p294_p3 = por %p293_p2, %p292_p1 }
   0xe   :  { %p295_p4 = pnand %p294_p3, %p288_p0 }
  0x83   :  { %v18_v4 = vpop.permute.xlu0 %17 }
  0x84   :  { %v340_v5 = vmul.f32 %v261_v3, %v18_v4 }
  0x86   :  { %v30_v6 = vand.u32 2139095040, %v340_v5  ;;  %v27_v10 = vand.u32 2147483647, %v340_v5  ;;  %vm29_vm7 = vcmp.lt.s32.totalorder %v340_v5, 0 }
  0x88   :  { %v31_v7 = vshrl.u32 %v30_v6, 23  ;;  %v34_v13 = vand.u32 8388607, %v27_v10  ;;  %vm28_vm8 = vcmp.le.f32.partialorder %v27_v10, 0.7853982 }
  0x8a   :  { %v262_v8 = vadd.s32 4294967169, %v31_v7  ;;  %v35_v32 = vor.u32 8388608, %v34_v13 }
  0x8c   :  { %v37_v9 = vadd.s32 1, %v262_v8  ;;  %v75_v46 = vshll.u32 %v35_v32, 8 }
  0x8e   :  { %vm38_vm0 = vcmp.gt.s32.totalorder %v37_v9, 0 }
  0x8f   :  { %v39_v11 = vsel %vm38_vm0, %v37_v9, 0  ;;  %vm119_vm0 = vweird.f32 %v340_v5 }
  0x90   :  { %v41_v12 = vand.u32 31, %v39_v11  ;;  %v40_v15 = vshrl.u32 %v39_v11, 5 }
  0x92   :  { %v42_v14 = vsub.s32 32, %v41_v12  ;;  %v44_v17 = vshll.u32 %v312_v16, %v41_v12  ;;  %v47_v19 = vshll.u32 %v313_v18, %v41_v12  ;;  %v50_v23 = vshll.u32 %v314_v21, %v41_v12 }
  0x93   :  { %v53_v26 = vshll.u32 %v315_v24, %v41_v12  ;;  %v56_v29 = vshll.u32 %v316_v27, %v41_v12  ;;  %vm59_vm1 = vcmp.lt.s32.totalorder %v40_v15, 1  ;;  %vm62_vm2 = vcmp.lt.s32.totalorder %v40_v15, 4 }
  0x94   :  { %v45_v20 = vshrl.u32 %v313_v18, %v42_v14  ;;  %v48_v22 = vshrl.u32 %v314_v21, %v42_v14  ;;  %v51_v25 = vshrl.u32 %v315_v24, %v42_v14  ;;  %v54_v28 = vshrl.u32 %v316_v27, %v42_v14 }
  0x95   :  { %v57_v31 = vshrl.u32 %v317_v30, %v42_v14  ;;  %v43_v41 = vshrl.u32 %v312_v16, %v42_v14  ;;  %vm61_vm3 = vcmp.lt.s32.totalorder %v40_v15, 3  ;;  %vm60_vm4 = vcmp.lt.s32.totalorder %v40_v15, 2 }
  0x96   :  { %v46_v33 = vor.u32 %v45_v20, %v44_v17  ;;  %v49_v34 = vor.u32 %v48_v22, %v47_v19  ;;  %v52_v35 = vor.u32 %v51_v25, %v50_v23  ;;  %v55_v36 = vor.u32 %v54_v28, %v53_v26 }
  0x97   :  { %v58_v37 = vor.u32 %v57_v31, %v56_v29  ;;  %v234_v26 = vlaneseq }
  0x98   :  { %v64_v38 = vsel %vm62_vm2, %v52_v35, 2102212464  ;;  %v67_v39 = vsel %vm59_vm1, %v46_v33, %v49_v34  ;;  %v71_v40 = vsel %vm59_vm1, %v49_v34, %v52_v35  ;;  %v68_v42 = vsel %vm62_vm2, %v55_v36, 920167782 }
  0x99   :  { %v72_v43 = vsel %vm62_vm2, %v58_v37, 1326507024  ;;  %v69_v44 = vsel %vm61_vm3, %v52_v35, %v68_v42  ;;  %v63_v47 = vsel %vm59_vm1, %v43_v41, %v46_v33  ;;  %v65_v48 = vsel %vm61_vm3, %v49_v34, %v64_v38  ;;  %v242_v42 = vpop.permute.xlu0 %241 }
  0x9a   :  { %v73_v45 = vsel %vm61_vm3, %v55_v36, %v72_v43  ;;  %v70_v49 = vsel %vm60_vm4, %v67_v39, %v69_v44  ;;  %v66_v55 = vsel %vm60_vm4, %v63_v47, %v65_v48  ;;  %v235_v29 = vand.u32 127, %v234_v26 }
  0x9b   :  { %v74_v50 = vsel %vm60_vm4, %v71_v40, %v73_v45  ;;  %v349_v53 = vmul.u32.u64.low %v75_v46, %v70_v49  ;;  %v350_v54 = vmul.u32.u64.high %v75_v46, %v70_v49, %v349_v53  ;;  %v82_v57 = vmul.u32 %v75_v46, %v66_v55 }
  0x9c   :  { %v346_v51 = vmul.u32.u64.low %v75_v46, %v74_v50  ;;  %v347_v52 = vmul.u32.u64.high %v75_v46, %v74_v50, %v346_v51  ;;  %vm237_vm11 = vcmp.le.s32.totalorder %v235_v29, 16  ;;  %vm236_vm1 = vcmp.eq.s32.totalorder %v235_v29, 0 }
  0x9d   :  { %v85_v56 = vadd.s32 1, %v350_v54  ;;  %vm245_vm2 = vcmask 269312  }
  0x9e   :  { %vm84_vm5 = vc.u32 %v347_v52, %v349_v53  ;;  %v83_v6 = vadd.s32 %v349_v53, %v347_v52 }
  0x9f   :  { %v86_v58 = vsel %vm84_vm5, %v85_v56, %v350_v54 }
  0xa0   :  { %v87_v59 = vadd.s32 %v86_v58, %v82_v57 }
  0xa2   :  { %v88_v60 = vadd.s32 536870912, %v87_v59 }
  0xa4   :  { %v89_v61 = vshrl.u32 %v88_v60, 30 }
  0xa6   :  { %v90_v62 = vshll.u32 %v89_v61, 30  ;;  %v113_v19 = vsub.s32 4, %v89_v61 }
  0xa8   :  { %v91_v63 = vsub.s32 %v87_v59, %v90_v62  ;;  %v114_v22 = vsel %vm29_vm7, %v113_v19, %v89_v61 }
  0xa9   :  { %v116_v24 = vsel %vm28_vm8, 0, %v114_v22 }
  0xaa   :  { %v93_v0 = vsub.s32 0, %v91_v63  ;;  %v120_v25 = vadd.s32 3, %v116_v24  ;;  %v224_v28 = vand.u32 3, %v116_v24 }
  0xac   :  { %v263_v1 = vmin.u32 %v93_v0, %v91_v63  ;;  %v121_v27 = vand.u32 3, %v120_v25  ;;  %vm229_vm10 = vcmp.eq.s32.totalorder %v224_v28, 2  ;;  %vm226_vm13 = vcmp.eq.s32.totalorder %v224_v28, 0 }
  0xad   :  { %vm225_vm15 = vcmp.lt.s32.totalorder %v224_v28, 2 }
  0xae   :  { %v95_v2 = vclz %v263_v1  ;;  %vm126_vm9 = vcmp.eq.s32.totalorder %v121_v27, 2  ;;  %vm123_vm12 = vcmp.eq.s32.totalorder %v121_v27, 0  ;;  %vm122_vm14 = vcmp.lt.s32.totalorder %v121_v27, 2 }
  0xb0   :  { %v264_v3 = vadd.s32 4294967294, %v95_v2 }
  0xb2   :  { %vm265_vm6 = vcmp.lt.s32.totalorder %v264_v3, 0 }
  0xb3   :  { %v98_v4 = vsel %vm265_vm6, 0, %v264_v3 }
  0xb4   :  { %v99_v7 = vsub.s32 32, %v98_v4  ;;  %v103_v8 = vsub.s32 4294967266, %v98_v4  ;;  %v100_v9 = vshll.u32 %v91_v63, %v98_v4 }
  0xb6   :  { %v101_v11 = vshrl.u32 %v83_v6, %v99_v7  ;;  %v104_v12 = vadd.s32 127, %v103_v8 }
  0xb8   :  { %v102_v13 = vor.u32 %v101_v11, %v100_v9  ;;  %v105_v14 = vshll.u32 %v104_v12, 23 }
  0xba   :  { %v106_v15 = vor.u32 4788187, %v105_v14  ;;  %v109_v17 = vcvt.s32.f32 %v102_v13 }
  0xbc   :  { %v107_v16 = vand.u32 2147483647, %v106_v15 }
  0xbe   :  { %v110_v18 = vmul.f32 %v109_v17, %v107_v16 }
  0xc0   :  { %v111_v20 = vxor.u32 2147483648, %v110_v18 }
  0xc2   :  { %v112_v21 = vsel %vm29_vm7, %v111_v20, %v110_v18 }
  0xc3   :  { %v115_v23 = vsel %vm28_vm8, %v340_v5, %v112_v21 }
  0xc4   :  { %283 = vcosq.f32 %v115_v23 }
  0xc5   :  { %285 = vsinq.f32 %v115_v23 }
  0xce   :  { %v284_v30 = vpop.eup %283 }
  0xcf   :  { %v286_v31 = vpop.eup %285  ;;  %v127_v32 = vxor.u32 2147483648, %v284_v30 }
  0xd0   :  { %v124_v33 = vxor.u32 2147483648, %v286_v31 }
  0xd1   :  { %v128_v10 = vsel %vm126_vm9, %v127_v32, %v286_v31  ;;  %v231_v34 = vsel %vm229_vm10, %v127_v32, %v286_v31 }
  0xd2   :  { %v125_v35 = vsel %vm123_vm12, %v284_v30, %v124_v33  ;;  %v228_v36 = vsel %vm226_vm13, %v284_v30, %v124_v33 }
  0xd3   :  { %v129_v37 = vsel %vm122_vm14, %v125_v35, %v128_v10  ;;  %v232_v38 = vsel %vm225_vm15, %v228_v36, %v231_v34 }
  0xd4   :  { %v130_v39 = vsel %vm119_vm0, nan, %v129_v37  ;;  %v233_v40 = vsel %vm119_vm0, nan, %v232_v38 }
  0xd5   :  { %v238_v41 = vsel %vm237_vm11, %v130_v39, %v233_v40 }
  0xd6   :  { %v244_v43 = vsel %vm236_vm1, %v242_v42, %v238_v41 }
  0xd7   :  { %246 = vst.msk [vmem:[#allocation2] sm:$0xff] %vm245_vm2, %v244_v43 }
  0xd8   :  { %298 = shalt.err (!%p295_p4)
}
  0xd9   :  { %s299_s16 = scalar_lea.hbm %s376_s2, 128 }
  0xda   :  { %p300_p5 = scmp.ne.s32.totalorder %s376_s2, %s299_s16  ;;  %p303_p6 = scmp.lt.u32.totalorder %s299_s16, %s376_s2 }
  0xdc   :  { %p305_p7 = pnand %p303_p6, %p300_p5 }
  0xde   :  { %308 = shalt.err (!%p305_p7)
}
  0xdf   :  { %256 = dma.vmem_to_hbm [thread:$0]  %s254_s1, 128, %s376_s2, [#allocation3]  }
  0xe0   :  { %309 = dma.done.wait [#allocation3], 128  }
  0xe1   :  { %310 = vsyncadd [#allocation3], 4294967168 }
  0xe2   :  { %260 = vsyncpa [#allocation3], 1 }

</bundles_post_ra>
